<compile_context>
chip_gen: v5e
topology: v5e:2x2
jax: 0.10.0
libtpu: 0.0.40
codegen_flags: <defaults>
</compile_context>

<pallas_src>
import jax
import jax.numpy as jnp
from jax.experimental import pallas as pl
from jax.experimental.pallas import tpu as pltpu

# F.normalize default eps (the module's self.eps is never used in forward).
_NORMALIZE_EPS = 1e-12
_EPS_SQ = _NORMALIZE_EPS * _NORMALIZE_EPS


def _pairwise_cosine_kernel(x_ref, y_ref, ix_ref, iy_ref, o_ref):
    # x_ref: (TM, D), y_ref: (TN, D), ix_ref: (TM, 1) f32, iy_ref: (1, TN) f32
    # Raw pairwise dot products on the MXU (bf16 operands stay bf16),
    # accumulated in f32.
    s = jax.lax.dot_general(
        x_ref[...], y_ref[...],
        dimension_numbers=(((1,), (1,)), ((), ())),
        preferred_element_type=jnp.float32)                  # (TM, TN)
    # Output-side scaling with precomputed inverse norms (broadcasts; no
    # transpose needed since inv_y is already lane-major).
    o_ref[...] = ((s * ix_ref[...]) * iy_ref[...]).astype(o_ref.dtype)


def _round_up(a, m):
    return ((a + m - 1) // m) * m


def _select_tiles(M, N, D, x_isz, y_isz, o_isz, budget, tm_max):
    """Pick (TM, TN): prefer whole-y residency, then minimal-padding large TM."""

    def vmem_bytes(tm, tn):
        # Double-buffered working set (x, y, out) + padded inv-norm buffers.
        return (2 * tm * D * x_isz + 2 * tn * D * y_isz
                + 2 * tm * tn * o_isz
                + 2 * tm * 128 * 4 + 2 * 8 * tn * 4)

    if M >= 256:
        cands = [t for t in (256, 512, 1024) if t <= tm_max]
        if not cands:
            cands = [max(16, (tm_max // 16) * 16)]
        # Minimize padded Mp (wasted MXU/HBM work), tie-break to larger TM.
        tms = sorted(set(cands), key=lambda t: (_round_up(M, t), -t))
    else:
        tms = [min(tm_max, max(16, _round_up(M, 16)))]

    n_full = _round_up(N, 128)
    tns = [n_full] + [t for t in (512, 256, 128) if t < n_full]

    for tn in tns:            # residency (tn == n_full) tried first
        for tm in tms:
            if vmem_bytes(tm, tn) <= budget:
                return tm, tn
    # Last-resort shrink for very large D: keep TN lane-dense, shrink TM.
    for tm in (128, 64, 32, 16):
        if vmem_bytes(tm, 128) <= budget:
            return tm, 128
    return 16, 128


def pairwise_cosine(x, y, *, tm_max=512, vmem_budget_bytes=24 * 1024 * 1024):
    """Pallas implementation of PairwiseCosine.forward (inter_batch=False).

    x: (B, M, D), y: (B, N, D) -> (B, M, N), dtype = promote(x, y).
    """
    B, M, D = x.shape
    By, N, Dy = y.shape
    assert B == By and D == Dy, "x and y must share batch and feature dims"

    out_dtype = jnp.promote_types(x.dtype, y.dtype)
    if M == 0 or N == 0:
        # torch path: xy = torch.zeros_like(xx * yy) when x.shape[1] == 0.
        return jnp.zeros((B, M, N), dtype=out_dtype)

    # Homogeneous MXU operand dtypes (matches torch's einsum promotion).
    if x.dtype != out_dtype:
        x = x.astype(out_dtype)
    if y.dtype != out_dtype:
        y = y.astype(out_dtype)

    x_isz = jnp.dtype(x.dtype).itemsize
    y_isz = jnp.dtype(y.dtype).itemsize
    o_isz = jnp.dtype(out_dtype).itemsize

    TM, TN = _select_tiles(M, N, D, x_isz, y_isz, o_isz,
                           vmem_budget_bytes, tm_max)
    Mp = _round_up(M, TM)
    Np = _round_up(N, TN)

    # v7x has 2 TensorCores: make sure the (all-parallel) grid has >= 2 steps.
    if B * (Mp // TM) * (Np // TN) < 2 and M > 16:
        TM = max(16, _round_up(-(-M // 2), 16))
        Mp = _round_up(M, TM)

    # Inverse row norms, computed ONCE in f32 (tiny arrays), hoisted out of the
    # tile loop.  rsqrt(max(ss, eps^2)) == 1 / max(||v||_2, eps).
    def inv_norm(v):
        ss = jnp.sum(jnp.square(v.astype(jnp.float32)), axis=-1)   # (B, R)
        return jax.lax.rsqrt(jnp.maximum(ss, _EPS_SQ))

    inv_x = inv_norm(x)                                             # (B, M)
    inv_y = inv_norm(y)                                             # (B, N)
    if Mp != M:
        inv_x = jnp.pad(inv_x, ((0, 0), (0, Mp - M)))               # zeros
    if Np != N:
        inv_y = jnp.pad(inv_y, ((0, 0), (0, Np - N)))               # zeros
    inv_x = inv_x[:, :, None]                                       # (B, Mp, 1)
    inv_y = inv_y[:, None, :]                                       # (B, 1, Np)

    # Grid: j innermost -> x is inner-invariant (read once from HBM); y is
    # streamed, or fully resident per batch when TN == Np (single j block).
    grid = (B, Mp // TM, Np // TN)

    out = pl.pallas_call(
        _pairwise_cosine_kernel,
        out_shape=jax.ShapeDtypeStruct((B, Mp, Np), out_dtype),
        grid=grid,
        in_specs=[
            pl.BlockSpec((None, TM, D), lambda b, i, j: (b, i, 0)),
            pl.BlockSpec((None, TN, D), lambda b, i, j: (b, j, 0)),
            pl.BlockSpec((None, TM, 1), lambda b, i, j: (b, i, 0)),
            pl.BlockSpec((None, 1, TN), lambda b, i, j: (b, 0, j)),
        ],
        out_specs=pl.BlockSpec((None, TM, TN), lambda b, i, j: (b, i, j)),
        compiler_params=pltpu.CompilerParams(
            dimension_semantics=("parallel", "parallel", "parallel"),
            vmem_limit_bytes=32 * 1024 * 1024),
    )(x, y, inv_x, inv_y)

    if Mp != M or Np != N:
        out = out[:, :M, :N]
    return out


def _reference(x, y):
    # Pure-JAX reference mirroring the torch forward (computed in f32).
    xf = x.astype(jnp.float32)
    yf = y.astype(jnp.float32)

    def normalize(v):
        n = jnp.sqrt(jnp.sum(v * v, axis=-1, keepdims=True))
        return v / jnp.maximum(n, _NORMALIZE_EPS)

    return jnp.einsum('bmd,bnd->bmn', normalize(xf), normalize(yf))


if __name__ == "__main__":
    # TODO(synk): inter_batch=True ('amd,bnd->abmn') variant not emitted; the
    # module default (inter_batch=False) is what is implemented here.
    key = jax.random.PRNGKey(0)
    k1, k2, k3, k4 = jax.random.split(key, 4)

    # Case 1: small f32 case; N padded to 128 internally for lane-dense stores.
    B, M, N, D = 2, 8, 8, 32
    x = jax.random.normal(k1, (B, M, D), dtype=jnp.float32)
    y = jax.random.normal(k2, (B, N, D), dtype=jnp.float32)
    out = jax.block_until_ready(pairwise_cosine(x, y))
    ref = _reference(x, y)
    assert out.shape == (B, M, N) and out.dtype == jnp.float32
    assert jnp.allclose(out, ref, atol=1e-4, rtol=1e-4), "f32 small case mismatch"

    # Case 2: non-divisible M/N (exercises edge over-read, padded-output slice,
    # and the resident-y path with a larger TM tile).
    B2, M2, N2, D2 = 2, 260, 200, 64
    x2 = jax.random.normal(k3, (B2, M2, D2), dtype=jnp.float32)
    y2 = jax.random.normal(k4, (B2, N2, D2), dtype=jnp.float32)
    out2 = jax.block_until_ready(pairwise_cosine(x2, y2))
    ref2 = _reference(x2, y2)
    assert out2.shape == (B2, M2, N2)
    assert jnp.allclose(out2, ref2, atol=1e-4, rtol=1e-4), "f32 tiled case mismatch"

    # Case 3: bf16 inputs -> bf16 operands on the MXU (f32 accumulation),
    # bf16 output (matches torch dtype behavior). Relaxed tolerance.
    xb = x.astype(jnp.bfloat16)
    yb = y.astype(jnp.bfloat16)
    out3 = jax.block_until_ready(pairwise_cosine(xb, yb))
    ref3 = _reference(xb, yb)
    assert out3.shape == (B, M, N) and out3.dtype == jnp.bfloat16
    assert jnp.allclose(out3.astype(jnp.float32), ref3, atol=2e-2, rtol=2e-2), \
        "bf16 case mismatch"

    # Degenerate sizes follow the torch zero-fallback shapes.
    assert pairwise_cosine(jnp.zeros((B, 0, D), jnp.float32), y).shape == (B, 0, N)
    assert pairwise_cosine(x, jnp.zeros((B, 0, D), jnp.float32)).shape == (B, M, 0)

    print("KERNEL_OK")
</pallas_src>

<mosaic_0001>
module attributes {stable_mosaic.version = 11 : i64} {
  func.func @_pairwise_cosine_kernel(%arg0: i32, %arg1: i32, %arg2: i32, %arg3: memref<1x16x32xf32, #tpu.memory_space<vmem>>, %arg4: memref<1x128x32xf32, #tpu.memory_space<vmem>>, %arg5: memref<1x16x1xf32, #tpu.memory_space<vmem>>, %arg6: memref<1x1x128xf32, #tpu.memory_space<vmem>>, %arg7: memref<1x16x128xf32, #tpu.memory_space<vmem>>) attributes {dimension_semantics = [#tpu.dimension_semantics<parallel>, #tpu.dimension_semantics<parallel>, #tpu.dimension_semantics<parallel>], iteration_bounds = array<i64: 2, 1, 1>, scalar_prefetch = 0 : i64, scratch_operands = 0 : i64, tpu.core_type = #tpu.core_type<tc>, window_params = [{transform_indices = @transform_0, window_bounds = array<i64: 1, 16, 32>}, {transform_indices = @transform_1, window_bounds = array<i64: 1, 128, 32>}, {transform_indices = @transform_2, window_bounds = array<i64: 1, 16, 1>}, {transform_indices = @transform_3, window_bounds = array<i64: 1, 1, 128>}, {transform_indices = @transform_4, window_bounds = array<i64: 1, 16, 128>}]} {
    %c0 = arith.constant 0 : index
    %c0_0 = arith.constant 0 : index
    %c0_1 = arith.constant 0 : index
    %0 = vector.load %arg3[%c0, %c0_0, %c0_1] : memref<1x16x32xf32, #tpu.memory_space<vmem>>, vector<1x16x32xf32>
    %1 = vector.shape_cast %0 : vector<1x16x32xf32> to vector<16x32xf32>
    %c0_2 = arith.constant 0 : index
    %c0_3 = arith.constant 0 : index
    %c0_4 = arith.constant 0 : index
    %2 = vector.load %arg4[%c0_2, %c0_3, %c0_4] : memref<1x128x32xf32, #tpu.memory_space<vmem>>, vector<1x128x32xf32>
    %3 = vector.shape_cast %2 : vector<1x128x32xf32> to vector<128x32xf32>
    %cst = arith.constant dense<0.000000e+00> : vector<16x128xf32>
    %4 = tpu.matmul %1, %3, %cst {dimension_numbers = #tpu.dot_dimension_numbers<[1], [1], [0], [0], [0, 0, 1, 0], [], []>} : vector<16x32xf32>, vector<128x32xf32>, vector<16x128xf32> -> vector<16x128xf32>
    %c0_5 = arith.constant 0 : index
    %c0_6 = arith.constant 0 : index
    %c0_7 = arith.constant 0 : index
    %5 = vector.load %arg5[%c0_5, %c0_6, %c0_7] : memref<1x16x1xf32, #tpu.memory_space<vmem>>, vector<1x16x1xf32>
    %6 = vector.shape_cast %5 : vector<1x16x1xf32> to vector<16x1xf32>
    %7 = vector.broadcast %6 : vector<16x1xf32> to vector<16x128xf32>
    %8 = arith.mulf %4, %7 : vector<16x128xf32>
    %c0_8 = arith.constant 0 : index
    %c0_9 = arith.constant 0 : index
    %c0_10 = arith.constant 0 : index
    %9 = vector.load %arg6[%c0_8, %c0_9, %c0_10] : memref<1x1x128xf32, #tpu.memory_space<vmem>>, vector<1x1x128xf32>
    %10 = vector.shape_cast %9 : vector<1x1x128xf32> to vector<1x128xf32>
    %11 = vector.broadcast %10 : vector<1x128xf32> to vector<16x128xf32>
    %12 = arith.mulf %8, %11 : vector<16x128xf32>
    %c0_11 = arith.constant 0 : index
    %c0_12 = arith.constant 0 : index
    %c0_13 = arith.constant 0 : index
    %13 = vector.load %arg7[%c0_11, %c0_12, %c0_13] : memref<1x16x128xf32, #tpu.memory_space<vmem>>, vector<1x16x128xf32>
    %14 = vector.shape_cast %13 : vector<1x16x128xf32> to vector<16x128xf32>
    %15 = vector.shape_cast %12 : vector<16x128xf32> to vector<1x16x128xf32>
    tpu.vector_store %arg7[%c0_11, %c0_12, %c0_13], %15 {strides = array<i32>} : memref<1x16x128xf32, #tpu.memory_space<vmem>>, vector<1x16x128xf32>,
    return
  }
  func.func @transform_0(%arg0: i32, %arg1: i32, %arg2: i32) -> (i32, i32, i32) {
    %c0_i32 = arith.constant 0 : i32
    %c0_i32_0 = arith.constant 0 : i32
    return %arg0, %arg1, %c0_i32 : i32, i32, i32
  }
  func.func @transform_1(%arg0: i32, %arg1: i32, %arg2: i32) -> (i32, i32, i32) {
    %c0_i32 = arith.constant 0 : i32
    %c0_i32_0 = arith.constant 0 : i32
    return %arg0, %arg2, %c0_i32 : i32, i32, i32
  }
  func.func @transform_2(%arg0: i32, %arg1: i32, %arg2: i32) -> (i32, i32, i32) {
    %c0_i32 = arith.constant 0 : i32
    %c0_i32_0 = arith.constant 0 : i32
    return %arg0, %arg1, %c0_i32 : i32, i32, i32
  }
  func.func @transform_3(%arg0: i32, %arg1: i32, %arg2: i32) -> (i32, i32, i32) {
    %c0_i32 = arith.constant 0 : i32
    %c0_i32_0 = arith.constant 0 : i32
    return %arg0, %c0_i32, %arg2 : i32, i32, i32
  }
  func.func @transform_4(%arg0: i32, %arg1: i32, %arg2: i32) -> (i32, i32, i32) {
    %c0_i32 = arith.constant 0 : i32
    return %arg0, %arg1, %arg2 : i32, i32, i32
  }
}

</mosaic_0001>

<bundles_post_ra>
// kernel: tpu_custom_call.1
= control target key start
LH: loop header
LB: loop body
LE: loop exit
PB: predicated region body
PF: predicated region fallthrough
CT: control target
= control target key end

     0   :  { %9 = vsyncpa [#allocation3], 0  ;;  %s1000_s0 = inlined_call_operand.vmem [shape: f32[2,8,32], index: 0, kind: input, shape index: {}]   ;;  %s1001_s1 = inlined_call_operand.vmem [shape: f32[2,8,32], index: 1, kind: input, shape index: {}]   ;;  %s1002_s2 = inlined_call_operand.vmem [shape: f32[2,16,1], index: 2, kind: input, shape index: {}]   ;;  %s1003_s3 = inlined_call_operand.vmem [shape: f32[2,1,128], index: 3, kind: input, shape index: {}]   ;;  %s1004_s4 = inlined_call_operand.hbm [shape: f32[2,16,128], index: 4, kind: output, shape index: {}]  }
   0x1   :  { %11 = vsyncpa [#allocation3 + $0x1], 0  ;;  %s828_s15 = smov 0   ;;  %s830_s16 = smov 0  }
   0x2   :  { %s832_s17 = smov 0   ;;  %s834_s18 = smov 0  }
   0x3   :  { %s836_s19 = smov 0   ;;  %s838_s20 = smov 0  }
   0x4 LB: > { %s609_s21 = sadd.s32 4294967295, %s798_s20   ;;  %s610_s22 = sadd.s32 4294967294, %s798_s20   ;;  %s798_s20 = sphi %s838_s20, %s17_s20   ;;  %s794_s19 = sphi %s836_s19, %s1011_s19   ;;  %s790_s18 = sphi %s834_s18, %s1010_s18   ;;  %s786_s17 = sphi %s832_s17, %s1009_s17   ;;  %s782_s16 = sphi %s830_s16, %s1008_s16   ;;  %s778_s15 = sphi %s828_s15, %s1007_s15  }
   0x5   : > { %s36_s23 = sadd.s32 1, %s794_s19  ;;  %s159_s24 = sadd.s32 1, %s786_s17 }
   0x6   : > { %p38_p0 = scmp.ge.s32.totalorder %s36_s23, 2  ;;  %p169_p1 = scmp.ne.s32.totalorder %s786_s17, %s782_s16 }
   0x7   : > { %p170_p2 = scmp.eq.s32.totalorder %s609_s21, 1  ;;  %p175_p3 = scmp.ne.s32.totalorder %s782_s16, %s778_s15 }
   0x8   : > { %s1013_s23 = smov (%p38_p0, %s36_s23), 0  ;;  %p176_p5 = scmp.eq.s32.totalorder %s610_s22, 1 }
   0x9   : > { %p868_p4 = por %p170_p2, %p169_p1  ;;  %s152_s26 = ssub.s32 %s794_s19, %s1013_s23 }
   0xa   : > { %p613_p6 = scmp.ge.s32.totalorder %s798_s20, 1  ;;  %p157_p7 = scmp.eq.s32.totalorder %s152_s26, 0 }
   0xb   : > { %p875_p8 = por %p176_p5, %p175_p3  ;;  %p248_p9 = scmp.lt.s32.totalorder %s798_s20, 3 }
   0xc   : > { %s881_s28 = scalar_select %p157_p7, %s786_s17, %s159_s24  }
   0xd   : > { %p249_p10 = pnand %p613_p6, %p248_p9 }
   0xe   : > { %p307_p11 = scmp.lt.s32.totalorder (!%p249_p10), %s790_s18, 1  ;;  %s301_s26 = sand.u32 (!%p249_p10), 1, %s782_s16  }
   0xf   : > { %252 = sbr.rel (%p249_p10) target bundleno = 223 (0xdf), region = 36  ;;  %s614_s5 = sshll.u32 (!%p249_p10), %s301_s26, 4 }
  0x10   : > { %s643_s6 = sshll.u32 (!%p249_p10), %s790_s18, 4  ;;  %s303_s12 = scalar_lea.vmem (!%p249_p10), [#allocation2], %s614_s5 }
  0x11   : > { %s480_s9 = scalar_lea.hbm (!%p249_p10), %s1004_s4, %s643_s6  ;;  %s481_s13 = sshll.u32 (!%p249_p10), %s303_s12, 4  ;;  %s482_s13 = int_to_ptr.vmem [resolvable:$true] %s481_s13 }
  0x14   : > { %s885_s29 = scalar_select %p307_p11, %s790_s18, 1  ;;  %vm365_vm0 = vcmask 261120   ;;  %v800_v9 = vmov 0  }
  0x15   : > { %718 = vset.pattern.permute.xlu0 %v800_v9  ;;  %s466_s18 = scalar_lea.sflag [#allocation3], %s301_s26 }
  0x16   : > { %s615_s30 = sshll.u32 %s885_s29, 3  ;;  %s642_s8 = sshll.u32 %s885_s29, 4 }
  0x17   : > { %s893_s7 = scalar_lea.vmem %s1001_s1, %s615_s30  ;;  %s345_s11 = scalar_lea.vmem %s1003_s3, %s885_s29 }
  0x18   : > { %v364_v0 = vld [vmem:[%s893_s7 + $0x78] sm:$0xff]  ;;  %v363_v1 = vld [vmem:[%s893_s7 + $0x70] sm:$0xff]  ;;  %v362_v2 = vld [vmem:[%s893_s7 + $0x68] sm:$0xff]  ;;  %s338_s14 = scalar_lea.vmem %s1002_s2, %s642_s8  ;;  %s313_s24 = scalar_lea.vmem %s1000_s0, %s615_s30 }
  0x19   : > { %619 = vmatpush.xpose.msk.msra.mxu0 %vm365_vm0, %v364_v0  ;;  %644 = vmatpush.xpose.msk.msra.mxu1 %vm365_vm0, %v364_v0  ;;  %v361_v3 = vld [vmem:[%s893_s7 + $0x60] sm:$0xff]  ;;  %v360_v4 = vld [vmem:[%s893_s7 + $0x58] sm:$0xff]  ;;  %v359_v5 = vld [vmem:[%s893_s7 + $0x50] sm:$0xff] }
  0x1a   : > { %v358_v6 = vld [vmem:[%s893_s7 + $0x48] sm:$0xff]  ;;  %v443_v7 = vld [vmem:[%s338_s14] sm:$0xff]  ;;  %v356_v10 = vld [vmem:[%s893_s7 + $0x38] sm:$0xff] }
  0x1b   : > { %v357_v8 = vld [vmem:[%s893_s7 + $0x40] sm:$0xff]  ;;  %447 = vperm.xlu0 %718, %v443_v7   ;;  %v444_v11 = vld [vmem:[%s338_s14 + $0x8] sm:$0xff]  ;;  %v355_v12 = vld [vmem:[%s893_s7 + $0x30] sm:$0xff]  ;;  %s483_s14 = sshll.u32 %s480_s9, 4  ;;  %s484_s14 = int_to_ptr.hbm [resolvable:$true] %s483_s14 }
  0x1c   : > { %v354_v13 = vld [vmem:[%s893_s7 + $0x28] sm:$0xff]  ;;  %v353_v14 = vld [vmem:[%s893_s7 + $0x20] sm:$0xff]  ;;  %v352_v15 = vld [vmem:[%s893_s7 + $0x18] sm:$0xff]  ;;  %s734_s21 = sshra.s32 %s484_s14, 4  ;;  %s735_s21 = int_to_ptr.hbm [resolvable:$true] %s734_s21 }
  0x1d   : > { %620 = vmatpush.xpose.msk.msra.mxu0 %vm365_vm0, %v363_v1  ;;  %645 = vmatpush.xpose.msk.msra.mxu1 %vm365_vm0, %v363_v1  ;;  %v351_v16 = vld [vmem:[%s893_s7 + $0x10] sm:$0xff]  ;;  %v350_v17 = vld [vmem:[%s893_s7 + $0x8] sm:$0xff]  ;;  %v349_v18 = vld [vmem:[%s893_s7] sm:$0xff]  ;;  %s736_s22 = scalar_lea.hbm %s735_s21, 16  ;;  %p741_p1 = scmp.lt.s32.totalorder %s735_s21, %s1004_s4 }
  0x1e   : > { %v347_v19 = vld [vmem:[%s313_s24] sm:$0xff]  ;;  %v348_v20 = vld [vmem:[%s313_s24 + $0x8] sm:$0xff]  ;;  %p737_p12 = scmp.ne.s32.totalorder %s735_s21, %s736_s22  ;;  %s740_s24 = scalar_lea.hbm %s1004_s4, 32 }
  0x1f   : > { %v719_v23 = vld [vmem:[%s345_s11] ss:$0 sm:$0xff]  ;;  %p742_p2 = scmp.lt.s32.totalorder %s740_s24, %s736_s22 }
  0x20   : > { %p738_p13 = pnand %p737_p12, %p868_p4 }
  0x21   : > { %621 = vmatpush.xpose.msk.msra.mxu0 %vm365_vm0, %v362_v2  ;;  %646 = vmatpush.xpose.msk.msra.mxu1 %vm365_vm0, %v362_v2  ;;  %p743_p3 = por %p742_p2, %p741_p1 }
  0x22   : > { %p739_p0 = pneg %p738_p13 }
  0x23   : > { %452 = vperm.xlu0 %718, %v444_v11  }
  0x24   : > { %p744_p5 = pnand %p743_p3, %p739_p0 }
  0x25   : > { %622 = vmatpush.xpose.msk.msra.mxu0 %vm365_vm0, %v361_v3  ;;  %647 = vmatpush.xpose.msk.msra.mxu1 %vm365_vm0, %v361_v3 }
  0x29   : > { %623 = vmatpush.xpose.msk.msra.mxu0 %vm365_vm0, %v360_v4  ;;  %648 = vmatpush.xpose.msk.msra.mxu1 %vm365_vm0, %v360_v4 }
  0x2d   : > { %624 = vmatpush.xpose.msk.msra.mxu0 %vm365_vm0, %v359_v5  ;;  %649 = vmatpush.xpose.msk.msra.mxu1 %vm365_vm0, %v359_v5 }
  0x31   : > { %625 = vmatpush.xpose.msk.msra.mxu0 %vm365_vm0, %v358_v6  ;;  %650 = vmatpush.xpose.msk.msra.mxu1 %vm365_vm0, %v358_v6 }
  0x35   : > { %626 = vmatpush.xpose.msk.msra.mxu0 %vm365_vm0, %v357_v8  ;;  %651 = vmatpush.xpose.msk.msra.mxu1 %vm365_vm0, %v357_v8 }
  0x39   : > { %627 = vmatpush.xpose.msk.msra.mxu0 %vm365_vm0, %v356_v10  ;;  %652 = vmatpush.xpose.msk.msra.mxu1 %vm365_vm0, %v356_v10 }
  0x3d   : > { %628 = vmatpush.xpose.msk.msra.mxu0 %vm365_vm0, %v355_v12  ;;  %653 = vmatpush.xpose.msk.msra.mxu1 %vm365_vm0, %v355_v12 }
  0x41   : > { %629 = vmatpush.xpose.msk.msra.mxu0 %vm365_vm0, %v354_v13  ;;  %654 = vmatpush.xpose.msk.msra.mxu1 %vm365_vm0, %v354_v13 }
  0x45   : > { %630 = vmatpush.xpose.msk.msra.mxu0 %vm365_vm0, %v353_v14  ;;  %655 = vmatpush.xpose.msk.msra.mxu1 %vm365_vm0, %v353_v14 }
  0x49   : > { %631 = vmatpush.xpose.msk.msra.mxu0 %vm365_vm0, %v352_v15  ;;  %656 = vmatpush.xpose.msk.msra.mxu1 %vm365_vm0, %v352_v15 }
  0x4d   : > { %632 = vmatpush.xpose.msk.msra.mxu0 %vm365_vm0, %v351_v16  ;;  %657 = vmatpush.xpose.msk.msra.mxu1 %vm365_vm0, %v351_v16 }
  0x51   : > { %633 = vmatpush.xpose.msk.msra.mxu0 %vm365_vm0, %v350_v17  ;;  %658 = vmatpush.xpose.msk.msra.mxu1 %vm365_vm0, %v350_v17 }
  0x55   : > { %634 = vmatpush.xpose.msk.msra.mxu0 %vm365_vm0, %v349_v18  ;;  %659 = vmatpush.xpose.msk.msra.mxu1 %vm365_vm0, %v349_v18 }
  0x58   : > { %635 = vmatmul.msk.f32.vlgmr.msra.gmra.mxu0 %vm365_vm0, %v347_v19  ;;  %636 = vmatmul.msk.f32.vlgmr.msra.gmra.mxu1 %vm365_vm0, %v348_v20 }
  0x8d   : > { %v448_v21 = vpop.permute.xlu0 %447 }
  0x95   : > { %v453_v22 = vpop.permute.xlu0 %452 }
  0xd5   : > { %v437_v24 = vpop.f32.mrf.mxu0  ;;  %v440_v25 = vpop.f32.mrf.mxu1 }
  0xd6   : > { %v455_v26 = vmul.f32 %v448_v21, %v437_v24  ;;  %v456_v27 = vmul.f32 %v453_v22, %v440_v25 }
  0xd8   : > { %v461_v28 = vmul.f32 %v719_v23, %v455_v26  ;;  %v462_v29 = vmul.f32 %v719_v23, %v456_v27 }
  0xda   : > { %463 = vst [vmem:[%s303_s12] sm:$0xff] %v461_v28 }
  0xdb   : > { %464 = vst [vmem:[%s303_s12 + $0x8] sm:$0xff] %v462_v29 }
  0xdc   : > { %747 = shalt.err (!%p744_p5)
}
  0xdd   : > { %s801_s26 = smov 128   ;;  %s802_s7 = smov 8  }
  0xde   : > { %660 = dma.vmem_to_hbm [thread:$0]  (%p868_p4), %s482_s13, 256, %s484_s14, %s466_s18, %s801_s26, %s801_s26, %s802_s7  }
  0xdf PF: > { %p666_p6 = scmp.ge.s32.totalorder %s798_s20, 2  ;;  %s498_s8 = sand.u32 1, %s778_s15  }
  0xe0   : > { %s499_s9 = scalar_lea.sflag [#allocation3], %s498_s8 }
  0xe1   : > { %p663_p7 = pnand %p666_p6, %p875_p8 }
  0xe3   : > { %p664_p9 = pneg %p663_p7 }
  0xe5   : > { %773 = dma.done.wait (%p664_p9), %s499_s9, 256  }
  0xe6   : > { %775 = vsyncadd (%p664_p9), %s499_s9, 4294967040  ;;  %s17_s20 = sadd.s32 1, %s798_s20   ;;  %s1007_s15 = smov %s782_s16 }
  0xe7   : > { %p14_p10 = scmp.ge.s32.totalorder %s17_s20, 4   ;;  %s1008_s16 = smov %s786_s17 }
  0xe8   : > { %s1009_s17 = smov %s881_s28  ;;  %s1010_s18 = smov %s794_s19 }
  0xe9   : > { %s1011_s19 = smov %s1013_s23  ;;  %16 = sbr.rel (!%p14_p10) target bundleno = 4 (0x4), region = 80 }
  0xee   :  { %505 = vsyncpa [#allocation3], 1 }
  0xef   :  { %507 = vsyncpa [#allocation3 + $0x1], 1 }

</bundles_post_ra>
